<compile_context>
chip_gen: v7x
topology: tpu7x:2x2x1
jax: 0.10.0
libtpu: 0.0.40
codegen_flags: <defaults>
</compile_context>

<pallas_src>
import numpy as np
import jax
import jax.numpy as jnp
from jax.experimental import pallas as pl
from jax.experimental.pallas import tpu as pltpu


# ---------------------------------------------------------------------------
# Parameter construction (mirrors WeightedMSE.__init__, deterministic)
# ---------------------------------------------------------------------------
def build_weights(h_vec, channels, height, scale_rng, scale):
    lower = int(np.abs(h_vec - scale_rng[0]).argmin())
    upper = int(np.abs(h_vec - scale_rng[1]).argmin())
    weights = np.ones((channels, height), dtype=np.float32)
    weights[:, upper:lower + 1] = scale
    weights = weights / weights.sum()
    return jnp.asarray(weights)


def _vmem_capacity_bytes(default=64 * 1024 * 1024):
    try:
        info = pltpu.get_tpu_info()
        return int(getattr(info, "vmem_capacity_bytes", default))
    except Exception:
        return default


# ---------------------------------------------------------------------------
# Pallas kernel factory: one per-tile partial sum per grid step
# ---------------------------------------------------------------------------
def _make_wmse_kernel(tb, tf, B, F, need_row_mask, need_col_mask):
    def kernel(w_ref, p_ref, t_ref, o_ref):
        # Cast first, then subtract (exact for bf16->f32; matches reference).
        p = p_ref[...].astype(jnp.float32)
        t = t_ref[...].astype(jnp.float32)
        d = p - t
        contrib = w_ref[...] * (d * d)          # (1, tf) broadcasts over tb rows

        if need_row_mask or need_col_mask:      # static flags: mask only if ragged
            valid = None
            if need_row_mask:
                rows = (jax.lax.broadcasted_iota(jnp.int32, (tb, tf), 0)
                        + pl.program_id(0) * tb)
                valid = rows < B
            if need_col_mask:
                cols = (jax.lax.broadcasted_iota(jnp.int32, (tb, tf), 1)
                        + pl.program_id(1) * tf)
                cval = cols < F
                valid = cval if valid is None else (valid & cval)
            # select (not multiply): OOB garbage may be NaN/Inf.
            contrib = jnp.where(valid, contrib, 0.0)

        total = jnp.sum(contrib)                # single XLU reduce per step
        o_ref[...] = jnp.full(o_ref.shape, total, dtype=jnp.float32)

    return kernel


# ---------------------------------------------------------------------------
# Wrapper: layout plumbing (views only, no copies) + pallas_call
# ---------------------------------------------------------------------------
def weighted_mse(y_pred, y_true, weights, *, vmem_budget_bytes=None):
    B, C, Z = y_pred.shape
    assert y_true.shape == (B, C, Z)
    assert weights.shape == (C, Z)
    F = C * Z
    n_total = B * F
    itemsize = jnp.dtype(y_pred.dtype).itemsize

    # ---- per-generation VMEM budget (v7x: 64 MiB/TC, v5e/v6e: 128 MiB) -----
    if vmem_budget_bytes is None:
        cap = _vmem_capacity_bytes()
        vmem_budget_bytes = max(16 * 1024 * 1024,
                                min(cap - 16 * 1024 * 1024, 100 * 1024 * 1024))
    vmem_budget_bytes = int(vmem_budget_bytes)
    # headroom for weights block, output blocks, Mosaic internal scratch
    input_budget = max(4 * 1024 * 1024, vmem_budget_bytes - 8 * 1024 * 1024)
    max_tile_bytes = input_budget // 4          # 2 inputs x 2 pipeline buffers

    # ---- feature tile: full F when it fits, else 128-multiple chunks -------
    if 8 * F * itemsize <= max_tile_bytes:
        tf = F                                   # full extent -> no pad needed
    else:
        tf = max(128, (max_tile_bytes // (8 * itemsize)) // 128 * 128)
        tf = min(tf, (F // 128) * 128)

    # ---- batch tile: multiple of 8 rows (or the whole small batch) ---------
    if B < 8:
        tb = B                                   # full extent -> allowed by (8,128) rule
    else:
        tb_cap = max(8, (max_tile_bytes // (tf * itemsize)) // 8 * 8)
        tb = min(tb_cap, (B // 8) * 8)           # never larger than the array

    steps_b = -(-B // tb)
    steps_f = -(-F // tf)
    need_row_mask = (B % tb) != 0
    need_col_mask = (F % tf) != 0

    # ---- layout plumbing: reshapes are views, no HBM copies -----------------
    p2 = y_pred.reshape(B, F)
    t2 = y_true.reshape(B, F)
    # fold the mean's 1/N into the tiny weights row (one-off host-side op)
    w2 = (weights.astype(jnp.float32) * jnp.float32(1.0 / n_total)).reshape(1, F)

    kernel = _make_wmse_kernel(tb, tf, B, F, need_row_mask, need_col_mask)

    out = pl.pallas_call(
        kernel,
        out_shape=jax.ShapeDtypeStruct((steps_b, steps_f, 8, 128), jnp.float32),
        grid_spec=pltpu.PrefetchScalarGridSpec(
            num_scalar_prefetch=0,
            grid=(steps_b, steps_f),
            in_specs=[
                pl.BlockSpec((1, tf), lambda i, j: (0, j)),    # weights row
                pl.BlockSpec((tb, tf), lambda i, j: (i, j)),   # y_pred tile
                pl.BlockSpec((tb, tf), lambda i, j: (i, j)),   # y_true tile
            ],
            out_specs=pl.BlockSpec((1, 1, 8, 128), lambda i, j: (i, j, 0, 0)),
        ),
        compiler_params=pltpu.CompilerParams(
            dimension_semantics=("parallel", "parallel"),
            vmem_limit_bytes=vmem_budget_bytes,
        ),
        cost_estimate=pl.CostEstimate(
            flops=4 * n_total,
            transcendentals=0,
            bytes_accessed=(2 * n_total * itemsize + F * 4
                            + steps_b * steps_f * 8 * 128 * 4),
        ),
    )(w2, p2, t2)

    # Each grid step's (8,128) slab holds its partial (already 1/N-scaled).
    return jnp.sum(out[:, :, 0, 0])


# ---------------------------------------------------------------------------
# Pure-JAX reference for sanity check
# ---------------------------------------------------------------------------
def weighted_mse_ref(y_pred, y_true, weights):
    loss = (y_pred.astype(jnp.float32) - y_true.astype(jnp.float32)) ** 2
    loss = weights[None, :, :] * loss
    return jnp.mean(loss)


if __name__ == "__main__":
    # Small synthetic config consistent with the module:
    channels, height = 4, 16            # [ch, z] weights
    batch = 2

    # Height vector in Mm, descending like a typical atmosphere grid.
    h_vec = np.linspace(2.0, -0.5, height).astype(np.float32)
    scale_rng = (0.0, 1.0)              # Mm range to up-weight
    scale = 5.0

    weights = build_weights(h_vec, channels, height, scale_rng, scale)

    key = jax.random.PRNGKey(0)
    k1, k2 = jax.random.split(key)
    y_pred = jax.random.normal(k1, (batch, channels, height), dtype=jnp.float32)
    y_true = jax.random.normal(k2, (batch, channels, height), dtype=jnp.float32)

    loss = jax.jit(weighted_mse)(y_pred, y_true, weights)
    loss = jax.block_until_ready(loss)

    ref = weighted_mse_ref(y_pred, y_true, weights)
    assert np.allclose(np.asarray(loss), np.asarray(ref), rtol=1e-5, atol=1e-6), (
        loss, ref
    )
    print("KERNEL_OK")
</pallas_src>

<mosaic_0001>
module attributes {stable_mosaic.version = 11 : i64} {
  func.func @kernel(%arg0: i32, %arg1: i32, %arg2: memref<1x64xf32, #tpu.memory_space<vmem>>, %arg3: memref<2x64xf32, #tpu.memory_space<vmem>>, %arg4: memref<2x64xf32, #tpu.memory_space<vmem>>, %arg5: memref<1x1x8x128xf32, #tpu.memory_space<vmem>>) attributes {dimension_semantics = [#tpu.dimension_semantics<parallel>, #tpu.dimension_semantics<parallel>], iteration_bounds = array<i64: 1, 1>, scalar_prefetch = 0 : i64, scratch_operands = 0 : i64, tpu.core_type = #tpu.core_type<tc>, window_params = [{transform_indices = @transform_0, window_bounds = array<i64: 1, 64>}, {transform_indices = @transform_1, window_bounds = array<i64: 2, 64>}, {transform_indices = @transform_2, window_bounds = array<i64: 2, 64>}, {transform_indices = @transform_3, window_bounds = array<i64: 1, 1, 8, 128>}]} {
    %c0 = arith.constant 0 : index
    %c0_0 = arith.constant 0 : index
    %0 = vector.load %arg3[%c0, %c0_0] : memref<2x64xf32, #tpu.memory_space<vmem>>, vector<2x64xf32>
    %c0_1 = arith.constant 0 : index
    %c0_2 = arith.constant 0 : index
    %1 = vector.load %arg4[%c0_1, %c0_2] : memref<2x64xf32, #tpu.memory_space<vmem>>, vector<2x64xf32>
    %2 = arith.subf %0, %1 : vector<2x64xf32>
    %c0_3 = arith.constant 0 : index
    %c0_4 = arith.constant 0 : index
    %3 = vector.load %arg2[%c0_3, %c0_4] : memref<1x64xf32, #tpu.memory_space<vmem>>, vector<1x64xf32>
    %4 = arith.mulf %2, %2 : vector<2x64xf32>
    %5 = vector.broadcast %3 : vector<1x64xf32> to vector<2x64xf32>
    %6 = arith.mulf %5, %4 : vector<2x64xf32>
    %7 = vector.shape_cast %6 : vector<2x64xf32> to vector<1x2x64xf32>
    %cst = arith.constant dense<0.000000e+00> : vector<1xf32>
    %8 = vector.multi_reduction <add>, %7, %cst [1, 2] : vector<1x2x64xf32> to vector<1xf32>
    %9 = vector.shape_cast %8 : vector<1xf32> to vector<1x1x1xf32>
    %10 = vector.extract %9[0, 0, 0] : f32 from vector<1x1x1xf32>
    %11 = vector.broadcast %10 : f32 to vector<1x1x8x128xf32>
    %c0_5 = arith.constant 0 : index
    %c0_6 = arith.constant 0 : index
    %c0_7 = arith.constant 0 : index
    %c0_8 = arith.constant 0 : index
    %12 = vector.load %arg5[%c0_5, %c0_6, %c0_7, %c0_8] : memref<1x1x8x128xf32, #tpu.memory_space<vmem>>, vector<1x1x8x128xf32>
    tpu.vector_store %arg5[%c0_5, %c0_6, %c0_7, %c0_8], %11 {strides = array<i32>} : memref<1x1x8x128xf32, #tpu.memory_space<vmem>>, vector<1x1x8x128xf32>,
    return
  }
  func.func @transform_0(%arg0: i32, %arg1: i32) -> (i32, i32) {
    %c0_i32 = arith.constant 0 : i32
    %c0_i32_0 = arith.constant 0 : i32
    return %c0_i32, %arg1 : i32, i32
  }
  func.func @transform_1(%arg0: i32, %arg1: i32) -> (i32, i32) {
    %c0_i32 = arith.constant 0 : i32
    return %arg0, %arg1 : i32, i32
  }
  func.func @transform_2(%arg0: i32, %arg1: i32) -> (i32, i32) {
    %c0_i32 = arith.constant 0 : i32
    return %arg0, %arg1 : i32, i32
  }
  func.func @transform_3(%arg0: i32, %arg1: i32) -> (i32, i32, i32, i32) {
    %c0_i32 = arith.constant 0 : i32
    %c0_i32_0 = arith.constant 0 : i32
    %c0_i32_1 = arith.constant 0 : i32
    return %arg0, %arg1, %c0_i32, %c0_i32_0 : i32, i32, i32, i32
  }
}

</mosaic_0001>

<bundles_post_ra>
// kernel: weighted_mse.1
= control target key start
LH: loop header
LB: loop body
LE: loop exit
PB: predicated region body
PF: predicated region fallthrough
CT: control target
= control target key end

     0   :  { %vm26_vm0 = vcmask 517120   ;;  %s78_s0 = inlined_call_operand.vmem [shape: f32[1,64], index: 0, kind: input, shape index: {}]   ;;  %s79_s1 = inlined_call_operand.vmem [shape: f32[2,64], index: 1, kind: input, shape index: {}]   ;;  %s80_s2 = inlined_call_operand.vmem [shape: f32[2,64], index: 2, kind: input, shape index: {}]   ;;  %s81_s3 = inlined_call_operand.vmem [shape: f32[1,1,8,128], index: 3, kind: output, shape index: {}]  }
   0x1   :  { %v14_v0 = vld [vmem:[%s79_s1] sm:$0x3] }
   0x2   :  { %v15_v1 = vld [vmem:[%s80_s2] sm:$0x3] }
   0x3   :  { %v16_v2 = vsub.f32 %v14_v0, %v15_v1  ;;  %v43_v3 = vld [vmem:[%s78_s0] ss:$0 sm:$0xff] }
   0x5   :  { %v18_v4 = vmul.f32 %v16_v2, %v16_v2 }
   0x7   :  { %v25_v5 = vmul.f32 %v43_v3, %v18_v4 }
   0x9   :  { %v27_v6 = vsel %vm26_vm0, %v25_v5, 0.0 }
   0xa   :  { %28 = vadd.xlane.f32.xlu0 %v27_v6 }
  0x97   :  { %v29_v7 = vpop.xlane.xlu0 %28 }
  0x98   :  { %v30_v8 = vrot.slane %v29_v7, 4 }
  0x9a   :  { %v31_v9 = vadd.f32 %v30_v8, %v29_v7 }
  0x9c   :  { %v32_v10 = vrot.slane %v31_v9, 2 }
  0x9e   :  { %v33_v11 = vadd.f32 %v32_v10, %v31_v9 }
  0xa0   :  { %v34_v12 = vrot.slane %v33_v11, 1 }
  0xa2   :  { %v35_v13 = vadd.f32 %v34_v12, %v33_v11 }
  0xa4   :  { %44 = vpush %v35_v13 }
  0xd5   :  { %s45_s1 = spop %44 }
  0xd6   :  { %v37_v14 = vstv %s45_s1 }
  0xd7   :  { %38 = vst [vmem:[%s81_s3] sm:$0xff] %v37_v14 }

</bundles_post_ra>
